<compile_context>
chip_gen: v6e
topology: v6e:2x2x1
jax: 0.10.0
libtpu: 0.0.40
codegen_flags: <defaults>
</compile_context>

<pallas_src>
import functools

import jax
import jax.numpy as jnp
from jax.experimental import pallas as pl
from jax.experimental.pallas import tpu as pltpu


def _round_up(x: int, m: int) -> int:
    return ((x + m - 1) // m) * m


def _temporal_encoder_kernel(pos_ref, omega_ref, scale_ref, out_ref, *,
                             half: int, split_store: bool):
    # pos_ref:   (TM, 1)    VMEM  -- row tile of flattened doy coords (input dtype)
    # omega_ref: (1, H)     VMEM  -- frequencies (H = embed_dim // 2), f32, resident
    # scale_ref: (1,)       SMEM  -- scalar scale, f32
    # out_ref:   (TM, 2*H)  VMEM  -- scale * [sin | cos], cast to out dtype on store
    #
    # Compute in f32 regardless of input dtype (bf16 phases up to ~365 rad would
    # lose essentially all mantissa); only the final store narrows.
    pos = pos_ref[...].astype(jnp.float32)                  # (TM, 1)
    phase = pos * omega_ref[...]                            # (TM, H) outer product (VPU)
    scale = scale_ref[0]

    if split_store:
        # half % 128 == 0: both half-stores are already lane-dense / unmasked,
        # so skip the lane-concatenation (XLU work + (TM, 2H) VMEM temporary).
        out_ref[:, :half] = (scale * jnp.sin(phase)).astype(out_ref.dtype)
        out_ref[:, half:] = (scale * jnp.cos(phase)).astype(out_ref.dtype)
    else:
        # Small / non-128-aligned embed_dim: build the tile and store once.
        # TODO(synk): for tiny embed_dim (<128) a lane-packed (M//K, K*embed_dim)
        # output layout would make every vst full-width; not implemented here.
        emb = jnp.concatenate([jnp.sin(phase), jnp.cos(phase)], axis=-1)
        out_ref[...] = (scale * emb).astype(out_ref.dtype)


def temporal_encoder(temporal_coords: jax.Array,
                     scale,
                     embed_dim: int,
                     *,
                     block_rows: int = 1024,
                     out_dtype=None) -> jax.Array:
    """Forward pass of TemporalEncoder (encoding_type='doy').

    Pass out_dtype=jnp.bfloat16 to halve HBM writeback bytes (the kernel's
    dominant cost); default keeps the module's semantics (output dtype = input dtype).
    """
    assert embed_dim % 2 == 0, f"Expected `embed_dim` to be even, got {embed_dim}"
    B, T, N = temporal_coords.shape
    assert N == 1, f"Expected last dim to be 1, got {N}"

    out_dtype = temporal_coords.dtype if out_dtype is None else jnp.dtype(out_dtype)
    M = B * T
    half = embed_dim // 2

    # Sublane row-packing factor of the output dtype (f32: 8, bf16: 16, 8-bit: 32).
    row_mult = 8 * max(1, 4 // jnp.dtype(out_dtype).itemsize)

    # Row-tile size:
    #  * large enough to amortize the ~0.35us/grid-step overhead (default 1024 rows),
    #  * small enough that double-buffered output + f32 temporaries fit v7x VMEM,
    #  * capped at ceil(M/2) so the grid has >= 2 steps and both v7x TCs get work.
    TM = min(_round_up(block_rows, row_mult), _round_up(pl.cdiv(M, 2), row_mult))
    TM = max(TM, row_mult)
    grid = (pl.cdiv(M, TM),)   # ragged last block is clamped by Pallas: no pad / no slice copy

    # doy = temporal_coords[:, :, 0].flatten() -> (M, 1) column (free reshape, no copy).
    pos = temporal_coords[:, :, 0].reshape(M, 1)

    # omega = 1 / 10000 ** (arange(half) / (embed_dim / 2)), built once in f32 (hoisted).
    omega = (1.0 / (10000.0 ** (jnp.arange(half, dtype=jnp.float32) / (embed_dim / 2.0))))
    omega = omega.reshape(1, half)

    scale_arr = jnp.asarray(scale, dtype=jnp.float32).reshape((1,))

    split_store = (half % 128 == 0)
    kernel = functools.partial(_temporal_encoder_kernel,
                               half=half, split_store=split_store)

    out = pl.pallas_call(
        kernel,
        out_shape=jax.ShapeDtypeStruct((M, embed_dim), out_dtype),
        grid=grid,
        in_specs=[
            pl.BlockSpec((TM, 1), lambda i: (i, 0)),            # pos row tile
            pl.BlockSpec((1, half), lambda i: (0, 0)),          # omega (resident, same block)
            pl.BlockSpec(memory_space=pltpu.MemorySpace.SMEM),  # scale scalar
        ],
        out_specs=pl.BlockSpec((TM, embed_dim), lambda i: (i, 0)),
        compiler_params=pltpu.CompilerParams(
            dimension_semantics=("parallel",)),  # v7x: shard row tiles across both TCs
    )(pos, omega, scale_arr)

    return out.reshape(B, T, embed_dim)


def _reference(temporal_coords, scale, embed_dim):
    """Pure-JAX reference mirroring the PyTorch module (f32 math)."""
    B, T, _ = temporal_coords.shape
    half = embed_dim // 2
    omega = 1.0 / (10000.0 ** (jnp.arange(half, dtype=jnp.float32) / (embed_dim / 2.0)))
    pos = temporal_coords[:, :, 0].reshape(-1).astype(jnp.float32)
    out = jnp.einsum('m,d->md', pos, omega)
    emb = jnp.concatenate([jnp.sin(out), jnp.cos(out)], axis=1)
    return (jnp.asarray(scale, jnp.float32).reshape(-1)[0] * emb).reshape(B, T, embed_dim)


if __name__ == "__main__":
    key = jax.random.PRNGKey(0)
    k1, k2, k3 = jax.random.split(key, 3)

    # Case 1: small embed_dim (concat path), aligned rows, trainable_scale=False (ones).
    embed_dim = 32
    B, T = 2, 8
    coords1 = jax.random.uniform(k1, (B, T, 1), dtype=jnp.float32,
                                 minval=0.0, maxval=365.0)
    scale1 = jnp.ones((1,), dtype=jnp.float32)
    out1 = jax.block_until_ready(temporal_encoder(coords1, scale1, embed_dim))
    ref1 = _reference(coords1, scale1, embed_dim)
    assert out1.shape == (B, T, embed_dim)
    assert jnp.allclose(out1, ref1, atol=1e-5, rtol=1e-5)

    # Case 2: unaligned rows (ragged last grid block), trainable-style scale = 0.1.
    B2, T2 = 3, 5
    coords2 = jax.random.uniform(k2, (B2, T2, 1), dtype=jnp.float32,
                                 minval=0.0, maxval=365.0)
    scale2 = jnp.full((1,), 0.1, dtype=jnp.float32)
    out2 = jax.block_until_ready(temporal_encoder(coords2, scale2, embed_dim))
    ref2 = _reference(coords2, scale2, embed_dim)
    assert out2.shape == (B2, T2, embed_dim)
    assert jnp.allclose(out2, ref2, atol=1e-5, rtol=1e-5)

    # Case 3: half % 128 == 0 (split-store path) with bf16 output (halved writeback).
    embed_dim3 = 256
    coords3 = jax.random.uniform(k3, (B, T, 1), dtype=jnp.float32,
                                 minval=0.0, maxval=365.0)
    scale3 = jnp.ones((1,), dtype=jnp.float32)
    out3 = jax.block_until_ready(
        temporal_encoder(coords3, scale3, embed_dim3, out_dtype=jnp.bfloat16))
    ref3 = _reference(coords3, scale3, embed_dim3)
    assert out3.shape == (B, T, embed_dim3) and out3.dtype == jnp.bfloat16
    assert jnp.allclose(out3.astype(jnp.float32), ref3, atol=2e-2, rtol=2e-2)

    print("KERNEL_OK")
</pallas_src>

<mosaic_0001>
module attributes {stable_mosaic.version = 11 : i64} {
  func.func @_temporal_encoder_kernel(%arg0: i32, %arg1: memref<8x1xf32, #tpu.memory_space<vmem>>, %arg2: memref<1x16xf32, #tpu.memory_space<vmem>>, %arg3: memref<1xf32, #tpu.memory_space<smem>>, %arg4: memref<8x32xf32, #tpu.memory_space<vmem>>) attributes {dimension_semantics = [#tpu.dimension_semantics<parallel>], iteration_bounds = array<i64: 2>, scalar_prefetch = 0 : i64, scratch_operands = 0 : i64, tpu.core_type = #tpu.core_type<tc>, window_params = [{transform_indices = @transform_0, window_bounds = array<i64: 8, 1>}, {pipeline_mode = #tpu.pipeline_mode<synchronous>, transform_indices = @transform_1, window_bounds = array<i64: 1, 16>}, {transform_indices = @transform_2, window_bounds = array<i64: 1>}, {transform_indices = @transform_3, window_bounds = array<i64: 8, 32>}]} {
    %c0 = arith.constant 0 : index
    %c0_0 = arith.constant 0 : index
    %0 = vector.load %arg1[%c0, %c0_0] : memref<8x1xf32, #tpu.memory_space<vmem>>, vector<8x1xf32>
    %c0_1 = arith.constant 0 : index
    %c0_2 = arith.constant 0 : index
    %1 = vector.load %arg2[%c0_1, %c0_2] : memref<1x16xf32, #tpu.memory_space<vmem>>, vector<1x16xf32>
    %2 = vector.broadcast %0 : vector<8x1xf32> to vector<8x16xf32>
    %3 = vector.broadcast %1 : vector<1x16xf32> to vector<8x16xf32>
    %4 = arith.mulf %2, %3 : vector<8x16xf32>
    %c0_3 = arith.constant 0 : index
    %5 = memref.load %arg3[%c0_3] : memref<1xf32, #tpu.memory_space<smem>>
    %6 = math.sin %4 : vector<8x16xf32>
    %7 = math.cos %4 : vector<8x16xf32>
    %8 = tpu.concatenate %6, %7 in 1 : vector<8x16xf32>, vector<8x16xf32> -> vector<8x32xf32>
    %9 = vector.broadcast %5 : f32 to vector<8x32xf32>
    %10 = arith.mulf %9, %8 : vector<8x32xf32>
    %c0_4 = arith.constant 0 : index
    %c0_5 = arith.constant 0 : index
    %11 = vector.load %arg4[%c0_4, %c0_5] : memref<8x32xf32, #tpu.memory_space<vmem>>, vector<8x32xf32>
    tpu.vector_store %arg4[%c0_4, %c0_5], %10 {strides = array<i32>} : memref<8x32xf32, #tpu.memory_space<vmem>>, vector<8x32xf32>,
    return
  }
  func.func @transform_0(%arg0: i32) -> (i32, i32) {
    %c0_i32 = arith.constant 0 : i32
    %c0_i32_0 = arith.constant 0 : i32
    return %arg0, %c0_i32 : i32, i32
  }
  func.func @transform_1(%arg0: i32) -> (i32, i32) {
    %c0_i32 = arith.constant 0 : i32
    %c0_i32_0 = arith.constant 0 : i32
    %c0_i32_1 = arith.constant 0 : i32
    return %c0_i32, %c0_i32_0 : i32, i32
  }
  func.func @transform_2(%arg0: i32) -> i32 {
    %c0_i32 = arith.constant 0 : i32
    %c0_i32_0 = arith.constant 0 : i32
    return %c0_i32 : i32
  }
  func.func @transform_3(%arg0: i32) -> (i32, i32) {
    %c0_i32 = arith.constant 0 : i32
    %c0_i32_0 = arith.constant 0 : i32
    return %arg0, %c0_i32 : i32, i32
  }
}

</mosaic_0001>

<bundles_post_ra>
// kernel: tpu_custom_call.1
= control target key start
LH: loop header
LB: loop body
LE: loop exit
PB: predicated region body
PF: predicated region fallthrough
CT: control target
= control target key end

     0   :  { %s752_s0 = inlined_call_operand.vmem [shape: f32[16,1], index: 0, kind: input, shape index: {}]   ;;  %s753_s1 = inlined_call_operand.vmem [shape: f32[1,16], index: 1, kind: input, shape index: {}]   ;;  %s754_s2 = inlined_call_operand.<no memory space> [shape: f32[1], index: 2, kind: input, shape index: {}]   ;;  %s755_s3 = inlined_call_operand.hbm [shape: f32[16,32], index: 3, kind: output, shape index: {}]  }
   0x1   :  { %8 = sst [smem:[#allocation2]] %s754_s2 }
   0x2   :  { %9 = vsyncpa [#allocation4], 0 }
   0x3   :  { %11 = vsyncpa [#allocation4 + $0x1], 0  ;;  %s641_s14 = smov 0   ;;  %s643_s15 = smov 0  }
   0x4   :  { %s645_s16 = smov 0   ;;  %s647_s17 = smov 0  }
   0x5 LB: > { %s662_s2 = sadd.s32 4294967295, %s607_s17   ;;  %s472_s18 = sadd.s32 4294967294, %s607_s17   ;;  %s607_s17 = sphi %s647_s17, %s761_s17   ;;  %s603_s16 = sphi %s645_s16, %s760_s16   ;;  %s599_s15 = sphi %s643_s15, %s759_s15   ;;  %s595_s14 = sphi %s641_s14, %s758_s14  }
   0x6   : > { %s666_s19 = sadd.s32 1, %s607_s17   ;;  %s92_s20 = sadd.s32 1, %s603_s16 }
   0x7   : > { %s89_s21 = ssub.s32 %s607_s17, %s666_s19  ;;  %p102_p0 = scmp.ne.s32.totalorder %s603_s16, %s599_s15 }
   0x8   : > { %p90_p1 = scmp.eq.s32.totalorder %s89_s21, 0  ;;  %p103_p2 = scmp.eq.s32.totalorder %s662_s2, 1 }
   0x9   : > { %p108_p3 = scmp.ne.s32.totalorder %s599_s15, %s595_s14  ;;  %p109_p4 = scmp.eq.s32.totalorder %s472_s18, 1 }
   0xa   : > { %s677_s22 = scalar_select %p90_p1, %s603_s16, %s92_s20  }
   0xb   : > { %p679_p5 = por %p103_p2, %p102_p0  ;;  %p683_p6 = por %p109_p4, %p108_p3 }
   0xc   : > { %p475_p7 = scmp.ge.s32.totalorder %s607_s17, 1  ;;  %p140_p8 = scmp.lt.s32.totalorder %s607_s17, 3 }
   0xe   : > { %p141_p9 = pnand %p475_p7, %p140_p8 }
   0xf   : > { %p163_p10 = scmp.lt.s32.totalorder (!%p141_p9), %s662_s2, 1  ;;  %s616_s5 = smov (!%p141_p9), 16  }
  0x10   : > { %144 = sbr.rel (%p141_p9) target bundleno = 365 (0x16d), region = 32  ;;  %s160_s6 = sand.u32 (!%p141_p9), 1, %s599_s15  }
  0x11   : > { %s181_s7 = sld [smem:[#allocation2]] (!%p141_p9)  ;;  %s476_s8 = sshll.u32 (!%p141_p9), %s160_s6, 3 }
  0x12   : > { %s488_s9 = sshll.u32 (!%p141_p9), %s662_s2, 7  ;;  %s162_s10 = scalar_lea.vmem (!%p141_p9), [#allocation3], %s476_s8 }
  0x13   : > { %s413_s11 = sshll.u32 (!%p141_p9), %s162_s10, 4  ;;  %s411_s18 = scalar_lea.hbm (!%p141_p9), %s755_s3, %s488_s9  ;;  %s414_s11 = int_to_ptr.vmem [resolvable:$true] %s413_s11 }
  0x14   : > { %s400_s20 = scalar_lea.sflag (!%p141_p9), [#allocation4], %s160_s6  ;;  %s547_s21 = scalar_lea.vmem (!%p141_p9), %s414_s11, 128 }
  0x15   : > { %v609_v0 = vmov 0   ;;  %s164_s25 = scalar_select %p163_p10, %s662_s2, 1  ;;  %v478_v2 = vld [vmem:[%s753_s1] ss:$0 sm:$0xff]  ;;  %v610_v15 = vmov 683565275  }
  0x16   : > { %542 = vset.pattern.permute.xlu0 %v609_v0  ;;  %v611_v17 = vmov 2475754826   ;;  %v612_v20 = vmov 2131351028   ;;  %v613_v23 = vmov 2102212464   ;;  %p548_p11 = scmp.ne.s32.totalorder %s414_s11, %s547_s21 }
  0x17   : > { %s477_s26 = sshll.u32 %s164_s25, 3  ;;  %v614_v26 = vmov 920167782   ;;  %v615_v29 = vmov 1326507024   ;;  %s617_s25 = smov [#allocation3]  }
  0x18   : > { %s166_s29 = scalar_lea.vmem %s752_s0, %s477_s26  ;;  %p549_p12 = pnand %p548_p11, %p679_p5 }
  0x19   : > { %v167_v1 = vld [vmem:[%s166_s29] sm:$0xff]  ;;  %s551_s2 = sshll.u32 %s617_s25, 4  ;;  %s552_s2 = int_to_ptr.vmem [resolvable:$false] %s551_s2 }
  0x1a   : > { %171 = vperm.xlu0 %542, %v167_v1   ;;  %p550_p13 = pneg %p549_p12  ;;  %s553_s26 = scalar_lea.vmem %s552_s2, 256 }
  0x1b   : > { %p554_p0 = scmp.lt.s32.totalorder %s414_s11, %s552_s2  ;;  %p555_p1 = scmp.lt.s32.totalorder %s553_s26, %s547_s21 }
  0x1d   : > { %p556_p2 = por %p555_p1, %p554_p0 }
  0x1f   : > { %p557_p3 = pnand %p556_p2, %p550_p13 }
  0x95   : > { %v172_v3 = vpop.permute.xlu0 %171 }
  0x96   : > { %v697_v4 = vmul.f32 %v478_v2, %v172_v3 }
  0x98   : > { %v185_v5 = vand.u32 2139095040, %v697_v4  ;;  %v182_v9 = vand.u32 2147483647, %v697_v4  ;;  %vm184_vm7 = vcmp.lt.s32.totalorder %v697_v4, 0  ;;  %vm274_vm15 = vweird.f32 %v697_v4 }
  0x9a   : > { %v186_v6 = vshrl.u32 %v185_v5, 23  ;;  %v189_v12 = vand.u32 8388607, %v182_v9  ;;  %vm183_vm8 = vcmp.le.f32.partialorder %v182_v9, 0.7853982 }
  0x9c   : > { %v479_v7 = vadd.s32 4294967169, %v186_v6  ;;  %v190_v31 = vor.u32 8388608, %v189_v12 }
  0x9e   : > { %v192_v8 = vadd.s32 1, %v479_v7  ;;  %v230_v45 = vshll.u32 %v190_v31, 8 }
  0xa0   : > { %vm193_vm0 = vcmp.gt.s32.totalorder %v192_v8, 0 }
  0xa1   : > { %v194_v10 = vsel %vm193_vm0, %v192_v8, 0  ;;  %vm393_vm0 = vcmask 130048  }
  0xa2   : > { %v196_v11 = vand.u32 31, %v194_v10  ;;  %v195_v14 = vshrl.u32 %v194_v10, 5 }
  0xa4   : > { %v197_v13 = vsub.s32 32, %v196_v11  ;;  %v199_v16 = vshll.u32 %v610_v15, %v196_v11  ;;  %v202_v18 = vshll.u32 %v611_v17, %v196_v11  ;;  %v205_v22 = vshll.u32 %v612_v20, %v196_v11 }
  0xa5   : > { %v208_v25 = vshll.u32 %v613_v23, %v196_v11  ;;  %v211_v28 = vshll.u32 %v614_v26, %v196_v11  ;;  %vm214_vm1 = vcmp.lt.s32.totalorder %v195_v14, 1  ;;  %vm217_vm2 = vcmp.lt.s32.totalorder %v195_v14, 4 }
  0xa6   : > { %v200_v19 = vshrl.u32 %v611_v17, %v197_v13  ;;  %v203_v21 = vshrl.u32 %v612_v20, %v197_v13  ;;  %v206_v24 = vshrl.u32 %v613_v23, %v197_v13  ;;  %v209_v27 = vshrl.u32 %v614_v26, %v197_v13 }
  0xa7   : > { %v212_v30 = vshrl.u32 %v615_v29, %v197_v13  ;;  %v198_v40 = vshrl.u32 %v610_v15, %v197_v13  ;;  %vm216_vm3 = vcmp.lt.s32.totalorder %v195_v14, 3  ;;  %vm215_vm4 = vcmp.lt.s32.totalorder %v195_v14, 2 }
  0xa8   : > { %v201_v32 = vor.u32 %v200_v19, %v199_v16  ;;  %v204_v33 = vor.u32 %v203_v21, %v202_v18  ;;  %v207_v34 = vor.u32 %v206_v24, %v205_v22  ;;  %v210_v35 = vor.u32 %v209_v27, %v208_v25 }
  0xa9   : > { %v213_v36 = vor.u32 %v212_v30, %v211_v28 }
  0xaa   : > { %v219_v37 = vsel %vm217_vm2, %v207_v34, 2102212464  ;;  %v222_v38 = vsel %vm214_vm1, %v201_v32, %v204_v33  ;;  %v226_v39 = vsel %vm214_vm1, %v204_v33, %v207_v34  ;;  %v223_v41 = vsel %vm217_vm2, %v210_v35, 920167782 }
  0xab   : > { %v227_v42 = vsel %vm217_vm2, %v213_v36, 1326507024  ;;  %v224_v43 = vsel %vm216_vm3, %v207_v34, %v223_v41  ;;  %v218_v46 = vsel %vm214_vm1, %v198_v40, %v201_v32  ;;  %v220_v47 = vsel %vm216_vm3, %v204_v33, %v219_v37 }
  0xac   : > { %v228_v44 = vsel %vm216_vm3, %v210_v35, %v227_v42  ;;  %v225_v48 = vsel %vm215_vm4, %v222_v38, %v224_v43  ;;  %v221_v54 = vsel %vm215_vm4, %v218_v46, %v220_v47  ;;  %v395_v38 = vstv %s181_s7 }
  0xad   : > { %v229_v49 = vsel %vm215_vm4, %v226_v39, %v228_v44  ;;  %v706_v52 = vmul.u32.u64.low %v230_v45, %v225_v48  ;;  %v707_v53 = vmul.u32.u64.high %v230_v45, %v225_v48, %v706_v52  ;;  %v237_v56 = vmul.u32 %v230_v45, %v221_v54 }
  0xae   : > { %v703_v50 = vmul.u32.u64.low %v230_v45, %v229_v49  ;;  %v704_v51 = vmul.u32.u64.high %v230_v45, %v229_v49, %v703_v50  ;;  %vm397_vm1 = vcmask 261120  }
  0xaf   : > { %v240_v55 = vadd.s32 1, %v707_v53 }
  0xb0   : > { %vm239_vm5 = vc.u32 %v704_v51, %v706_v52  ;;  %v238_v5 = vadd.s32 %v706_v52, %v704_v51 }
  0xb1   : > { %v241_v57 = vsel %vm239_vm5, %v240_v55, %v707_v53 }
  0xb2   : > { %v242_v58 = vadd.s32 %v241_v57, %v237_v56 }
  0xb4   : > { %v243_v59 = vadd.s32 536870912, %v242_v58 }
  0xb6   : > { %v244_v60 = vshrl.u32 %v243_v59, 30 }
  0xb8   : > { %v245_v61 = vshll.u32 %v244_v60, 30  ;;  %v268_v19 = vsub.s32 4, %v244_v60 }
  0xba   : > { %v246_v62 = vsub.s32 %v242_v58, %v245_v61  ;;  %v269_v22 = vsel %vm184_vm7, %v268_v19, %v244_v60 }
  0xbb   : > { %v271_v23 = vsel %vm183_vm8, 0, %v269_v22 }
  0xbc   : > { %v248_v63 = vsub.s32 0, %v246_v62  ;;  %v275_v24 = vadd.s32 3, %v271_v23  ;;  %v379_v26 = vand.u32 3, %v271_v23 }
  0xbe   : > { %v480_v0 = vmin.u32 %v248_v63, %v246_v62  ;;  %v276_v25 = vand.u32 3, %v275_v24  ;;  %vm384_vm10 = vcmp.eq.s32.totalorder %v379_v26, 2  ;;  %vm381_vm12 = vcmp.eq.s32.totalorder %v379_v26, 0 }
  0xbf   : > { %vm380_vm14 = vcmp.lt.s32.totalorder %v379_v26, 2 }
  0xc0   : > { %v250_v1 = vclz %v480_v0  ;;  %vm281_vm9 = vcmp.eq.s32.totalorder %v276_v25, 2  ;;  %vm278_vm11 = vcmp.eq.s32.totalorder %v276_v25, 0  ;;  %vm277_vm13 = vcmp.lt.s32.totalorder %v276_v25, 2 }
  0xc2   : > { %v481_v2 = vadd.s32 4294967294, %v250_v1 }
  0xc4   : > { %vm482_vm6 = vcmp.lt.s32.totalorder %v481_v2, 0 }
  0xc5   : > { %v253_v3 = vsel %vm482_vm6, 0, %v481_v2 }
  0xc6   : > { %v254_v6 = vsub.s32 32, %v253_v3  ;;  %v258_v7 = vsub.s32 4294967266, %v253_v3  ;;  %v255_v8 = vshll.u32 %v246_v62, %v253_v3 }
  0xc8   : > { %v256_v10 = vshrl.u32 %v238_v5, %v254_v6  ;;  %v259_v11 = vadd.s32 127, %v258_v7 }
  0xca   : > { %v257_v12 = vor.u32 %v256_v10, %v255_v8  ;;  %v260_v13 = vshll.u32 %v259_v11, 23 }
  0xcc   : > { %v261_v14 = vor.u32 4788187, %v260_v13  ;;  %v264_v16 = vcvt.s32.f32 %v257_v12 }
  0xce   : > { %v262_v15 = vand.u32 2147483647, %v261_v14 }
  0xd0   : > { %v265_v17 = vmul.f32 %v264_v16, %v262_v15 }
  0xd2   : > { %v266_v18 = vxor.u32 2147483648, %v265_v17 }
  0xd4   : > { %v267_v20 = vsel %vm184_vm7, %v266_v18, %v265_v17 }
  0xd5   : > { %v270_v21 = vsel %vm183_vm8, %v697_v4, %v267_v20 }
  0xd6   : > { %543 = vcosq.f32 %v270_v21 }
  0xd7   : > { %545 = vsinq.f32 %v270_v21 }
  0xe3   : > { %v544_v27 = vpop.eup %543 }
  0xe4   : > { %v546_v28 = vpop.eup %545  ;;  %v282_v29 = vxor.u32 2147483648, %v544_v27 }
  0xe5   : > { %v279_v30 = vxor.u32 2147483648, %v546_v28 }
  0xe6   : > { %v386_v31 = vsel %vm384_vm10, %v282_v29, %v546_v28  ;;  %v283_v9 = vsel %vm281_vm9, %v282_v29, %v546_v28 }
  0xe7   : > { %v383_v32 = vsel %vm381_vm12, %v544_v27, %v279_v30  ;;  %v280_v33 = vsel %vm278_vm11, %v544_v27, %v279_v30 }
  0xe8   : > { %v387_v34 = vsel %vm380_vm14, %v383_v32, %v386_v31  ;;  %v284_v35 = vsel %vm277_vm13, %v280_v33, %v283_v9 }
  0xe9   : > { %v388_v36 = vsel %vm274_vm15, nan, %v387_v34  ;;  %v285_v37 = vsel %vm274_vm15, nan, %v284_v35 }
  0xea   : > { %390 = vrot.lane.b32.xlu0 %v388_v36, %s616_s5 }
 0x15c   : > { %v391_v39 = vpop.permute.xlu0 %390 }
 0x15d   : > { %v394_v40 = vsel %vm393_vm0, %v285_v37, %v391_v39 }
 0x15e   : > { %v396_v41 = vmul.f32 %v395_v38, %v394_v40 }
 0x160   : > { %398 = vst.msk [vmem:[%s162_s10] sm:$0xff] %vm397_vm1, %v396_v41 }
 0x161   : > { %560 = shalt.err (!%p557_p3)
}
 0x162   : > { %s561_s27 = scalar_lea.hbm %s411_s18, 128  ;;  %s565_s30 = scalar_lea.hbm %s755_s3, 256 }
 0x163   : > { %p562_p4 = scmp.ne.s32.totalorder %s411_s18, %s561_s27  ;;  %p566_p9 = scmp.lt.s32.totalorder %s411_s18, %s755_s3 }
 0x164   : > { %p567_p10 = scmp.lt.s32.totalorder %s565_s30, %s561_s27 }
 0x165   : > { %p563_p7 = pnand %p562_p4, %p679_p5 }
 0x166   : > { %p568_p11 = por %p567_p10, %p566_p9 }
 0x167   : > { %p564_p8 = pneg %p563_p7 }
 0x169   : > { %p569_p12 = pnand %p568_p11, %p564_p8 }
 0x16b   : > { %572 = shalt.err (!%p569_p12)
}
 0x16c   : > { %495 = dma.vmem_to_hbm [thread:$0]  (%p679_p5), %s414_s11, 128, %s411_s18, %s400_s20  }
 0x16d PF: > { %p501_p13 = scmp.ge.s32.totalorder %s607_s17, 2  ;;  %s425_s6 = sand.u32 1, %s595_s14  }
 0x16e   : > { %s426_s7 = scalar_lea.sflag [#allocation4], %s425_s6 }
 0x16f   : > { %p498_p0 = pnand %p501_p13, %p683_p6 }
 0x171   : > { %p499_p1 = pneg %p498_p0 }
 0x173   : > { %590 = dma.done.wait (%p499_p1), %s426_s7, 128  }
 0x174   : > { %592 = vsyncadd (%p499_p1), %s426_s7, 4294967168  ;;  %p14_p2 = scmp.ge.s32.totalorder %s666_s19, 4   ;;  %s758_s14 = smov %s599_s15 }
 0x175   : > { %s759_s15 = smov %s603_s16  ;;  %s760_s16 = smov %s677_s22 }
 0x176   : > { %s761_s17 = smov %s666_s19  ;;  %16 = sbr.rel (!%p14_p2) target bundleno = 5 (0x5), region = 67 }
 0x17b   :  { %431 = vsyncpa [#allocation4], 1 }
 0x17c   :  { %433 = vsyncpa [#allocation4 + $0x1], 1 }

</bundles_post_ra>
